<compile_context>
chip_gen: v7x
topology: tpu7x:2x2x1
jax: 0.10.0
libtpu: 0.0.40
codegen_flags: <defaults>
</compile_context>

<pallas_src>
from functools import lru_cache

import numpy as np
import jax
import jax.numpy as jnp
from jax.experimental import pallas as pl
from jax.experimental.pallas import tpu as pltpu

# ---------------- model hyper-parameters (from E_3DSNN_T.__init__) ----------------
IN_CHANNELS  = 4            # config.model.in_channel
NUM_CLASSES  = 5            # config.model.out_channel
VOXEL_SIZE   = 1.0          # config.model.voxel_size
EMBED_CH     = 16
ENC_CHANNELS = [16, 32, 64, 128]
BN_EPS       = 1e-3
SPIKE_THRE   = 4.0

TARGET_TILE_BYTES = 4 << 20     # ~4 MiB of gathered input per grid step
MAX_TILE_ROWS     = 4096


def _round_up(v, m):
    return ((v + m - 1) // m) * m


def _pad_and_tile(n_real, kc, itemsize):
    """Choose (n_pad, tile_n) for a stage.

    tile_n targets ~TARGET_TILE_BYTES of gathered (tile_n, kc) input per grid step (multiple of
    16 rows for bf16 sublane packing); n_pad >= n_real+1 (guaranteed all-zero row for missing
    neighbours) and an exact multiple of tile_n; >=2 grid steps whenever possible so the
    "parallel" grid axis shards across both TensorCores on v7x."""
    max_tile = (TARGET_TILE_BYTES // (kc * itemsize)) // 16 * 16
    max_tile = max(16, min(MAX_TILE_ROWS, max_tile))
    n_min = _round_up(n_real + 1, 16)
    if n_min > max_tile:
        return _round_up(n_min, max_tile), max_tile
    if n_min >= 32:
        tile = _round_up(n_min // 2, 16)
        return 2 * tile, tile
    return n_min, n_min


# ---------------- Pallas kernels: fused matmul + BN affine (+ residual) + spike ----------------
def _make_conv_kernel(with_residual, emit_f32, emit_spike):
    def kernel(*refs):
        g_ref, w_ref, scale_ref, shift_ref = refs[:4]
        pos = 4
        if with_residual:
            res_ref = refs[pos]
            pos += 1
        outs = refs[pos:]
        y = jnp.dot(g_ref[...], w_ref[...], preferred_element_type=jnp.float32)
        y = y * scale_ref[...] + shift_ref[...]
        if with_residual:
            y = y + res_ref[...]
        o = 0
        if emit_f32:
            outs[o][...] = y
            o += 1
        if emit_spike:
            # Multispike: floor(clamp(x, 0, 4) + 0.5), computed in f32, stored as bf16 (exact,
            # values are small integers).  Runs on VPU slots that are idle while DMA-bound.
            outs[o][...] = jnp.floor(jnp.clip(y, 0.0, SPIKE_THRE) + 0.5).astype(jnp.bfloat16)
    return kernel


@lru_cache(maxsize=None)
def _conv_call(n_pad, tile_n, kc, c_out, with_residual, emit_f32, emit_spike):
    """Build (and cache) the pallas_call for one layer signature."""
    in_specs = [
        pl.BlockSpec((tile_n, kc), lambda i: (i, 0)),     # gathered (Nout, K*Cin) slab
        pl.BlockSpec((kc, c_out), lambda i: (0, 0)),      # flattened (K*Cin, Cout) weights
        pl.BlockSpec((1, c_out), lambda i: (0, 0)),       # BN scale
        pl.BlockSpec((1, c_out), lambda i: (0, 0)),       # BN shift
    ]
    if with_residual:
        in_specs.append(pl.BlockSpec((tile_n, c_out), lambda i: (i, 0)))

    out_shapes, out_specs = [], []
    if emit_f32:
        out_shapes.append(jax.ShapeDtypeStruct((n_pad, c_out), jnp.float32))
        out_specs.append(pl.BlockSpec((tile_n, c_out), lambda i: (i, 0)))
    if emit_spike:
        out_shapes.append(jax.ShapeDtypeStruct((n_pad, c_out), jnp.bfloat16))
        out_specs.append(pl.BlockSpec((tile_n, c_out), lambda i: (i, 0)))

    return pl.pallas_call(
        _make_conv_kernel(with_residual, emit_f32, emit_spike),
        out_shape=tuple(out_shapes),
        grid_spec=pltpu.PrefetchScalarGridSpec(
            num_scalar_prefetch=0,
            grid=(n_pad // tile_n,),
            in_specs=in_specs,
            out_specs=tuple(out_specs),
        ),
        compiler_params=pltpu.CompilerParams(
            dimension_semantics=("parallel",),            # shard Nout tiles across TCs on v7x
            vmem_limit_bytes=32 * 1024 * 1024,            # safe on v5e/v6e/v7x scoped budgets
        ),
    )


def _conv_device(feat, idx_t, w2, scale, shift, residual, *, tile, emit_f32, emit_spike):
    """Device side of one sparse conv: XLA row gather + fused Pallas matmul/BN/residual/spike."""
    n_out_pad, K = idx_t.shape
    c_in = feat.shape[1]
    c_out = w2.shape[1]
    # TODO(synk): this gather still materializes the (Nout, K*Cin) slab in HBM (see header).
    g = jnp.take(feat, idx_t, axis=0).reshape(n_out_pad, K * c_in)
    call = _conv_call(n_out_pad, tile, K * c_in, c_out,
                      residual is not None, emit_f32, emit_spike)
    args = [g, w2, scale, shift]
    if residual is not None:
        args.append(residual)
    return call(*args)


_conv_device_jit = jax.jit(_conv_device, static_argnames=("tile", "emit_f32", "emit_spike"))


def sparse_conv(feat, idx, w, scale, shift, tile, residual=None,
                emit_f32=False, emit_spike=True):
    """feat: (Nin_pad, Cin) device array (bf16 spiked activations, or raw f32 for the first conv);
    idx: host NumPy (K, Nout_pad) int32 rulebook, -1 = missing neighbour;
    w: (K, Cin, Cout) f32 parameters.
    Returns (out_f32 or None, out_spike_bf16 or None), each (Nout_pad, Cout)."""
    K, n_out_pad = idx.shape
    c_in, c_out = feat.shape[1], w.shape[2]
    n_in_pad = feat.shape[0]
    # Missing neighbours -> last padded row of the input, which is guaranteed all-zero
    # (n_in_pad >= n_valid+1 and padded rows stay zero through every layer because BN shift==0
    #  with init-time statistics and spike(0)==0).  No per-layer concatenate copy.
    idx_t = jnp.asarray(np.where(idx < 0, n_in_pad - 1, idx).T.astype(np.int32))
    # TODO(synk): weights follow the activation dtype (bf16 after the first layer).
    w2 = jnp.asarray(w.reshape(K * c_in, c_out), dtype=feat.dtype)
    outs = list(_conv_device_jit(feat, idx_t, w2, scale.reshape(1, -1), shift.reshape(1, -1),
                                 residual, tile=tile, emit_f32=emit_f32, emit_spike=emit_spike))
    out_f32 = outs.pop(0) if emit_f32 else None
    out_spk = outs.pop(0) if emit_spike else None
    return out_f32, out_spk


# ---------------- host-side rulebook construction (sparse geometry, vectorized NumPy) ----------
_SUBM_OFFSETS = [(dz, dy, dx) for dz in (-1, 0, 1) for dy in (-1, 0, 1) for dx in (-1, 0, 1)]
_DOWN_OFFSETS = [(dz, dy, dx) for dz in (0, 1) for dy in (0, 1) for dx in (0, 1)]


def _linear_keys(coords, dims):
    """coords: (N, 4) int [batch, z, y, x] -> unique int64 key (room for +/-1 neighbours)."""
    b = coords[:, 0].astype(np.int64)
    z = coords[:, 1].astype(np.int64) + 1
    y = coords[:, 2].astype(np.int64) + 1
    x = coords[:, 3].astype(np.int64) + 1
    return ((b * dims[0] + z) * dims[1] + y) * dims[2] + x


def _coord_dims(coords):
    return tuple(int(coords[:, d].max()) + 3 for d in (1, 2, 3))


def build_subm_rulebook(coords, n_pad):
    """SubMConv3d(k=3, pad=1): output sites == input sites, 27 neighbour offsets."""
    n = coords.shape[0]
    dims = _coord_dims(coords)
    keys = _linear_keys(coords, dims)
    order = np.argsort(keys)
    skeys = keys[order]
    idx = np.full((len(_SUBM_OFFSETS), n_pad), -1, np.int32)
    for k, off in enumerate(_SUBM_OFFSETS):
        q = coords.astype(np.int64).copy()
        q[:, 1:] += np.asarray(off, np.int64)
        qk = _linear_keys(q, dims)
        pos = np.minimum(np.searchsorted(skeys, qk), n - 1)
        hit = skeys[pos] == qk
        idx[k, :n] = np.where(hit, order[pos], -1)
    return idx


def build_down_rulebook(coords):
    """SparseConv3d(k=2, s=2): output sites = unique(coord // 2), 8 neighbour offsets."""
    n = coords.shape[0]
    dims = _coord_dims(coords)
    keys = _linear_keys(coords, dims)
    order = np.argsort(keys)
    skeys = keys[order]

    down = coords.copy()
    down[:, 1:] = down[:, 1:] // 2
    _, first = np.unique(_linear_keys(down, dims), return_index=True)
    out_coords = down[np.sort(first)]                       # first-occurrence order
    n_out = out_coords.shape[0]

    idx = np.full((len(_DOWN_OFFSETS), n_out), -1, np.int32)
    base = out_coords.astype(np.int64).copy()
    base[:, 1:] *= 2
    for k, off in enumerate(_DOWN_OFFSETS):
        q = base.copy()
        q[:, 1:] += np.asarray(off, np.int64)
        qk = _linear_keys(q, dims)
        pos = np.minimum(np.searchsorted(skeys, qk), n - 1)
        hit = skeys[pos] == qk
        idx[k] = np.where(hit, order[pos], -1)
    return out_coords, idx


def voxelize(xyz_list, voxel_size):
    lengths = [a.shape[0] for a in xyz_list]
    batch = np.concatenate([np.full(nb, b, np.int32) for b, nb in enumerate(lengths)])
    xyz = np.concatenate(xyz_list, axis=0)
    grid = np.trunc((xyz - xyz.min(axis=0, keepdims=True)) / voxel_size).astype(np.int32)
    return np.concatenate([batch[:, None], grid], axis=1)    # (N, 4): [batch, z, y, x]


# ---------------- deterministic parameter init (mirrors _init_weights) ----------------
def _trunc_normal(key, shape, std=0.02):
    return (std * jax.random.truncated_normal(key, -2.0, 2.0, shape)).astype(jnp.float32)


def init_params(key):
    params = {}

    def add(name, shape):
        nonlocal key
        key, sub = jax.random.split(key)
        params[name] = _trunc_normal(sub, shape)

    add('stem0', (27, IN_CHANNELS, EMBED_CH))
    add('stem1', (27, EMBED_CH, EMBED_CH))
    add('stem2', (27, EMBED_CH, EMBED_CH))
    c_prev = EMBED_CH
    for i, c in enumerate(ENC_CHANNELS):
        add(f'down{i}', (8, c_prev, c))
        add(f'blk{i}', (27, c, c))       # BasicBlock.block conv
        add(f'vox{i}a', (27, c, c))      # BasicBlock.voxel_block conv 1
        add(f'vox{i}b', (27, c, c))      # BasicBlock.voxel_block conv 2
        c_prev = c
    add('final', (1, ENC_CHANNELS[-1], NUM_CLASSES))
    params['final_bias'] = jnp.zeros((NUM_CLASSES,), jnp.float32)   # init.constant_(bias, 0)
    return params


def bn_affine(c):
    # BatchNorm1d(eps=1e-3) with init-time statistics: mean=0, var=1, gamma=1, beta=0.
    scale = jnp.full((c,), 1.0 / np.sqrt(1.0 + BN_EPS), jnp.float32)
    shift = jnp.zeros((c,), jnp.float32)
    return scale, shift


# ---------------- full E_3DSNN_T forward ----------------
def e3dsnn_forward(coords, feat, params):
    n = coords.shape[0]
    n_pad, tile = _pad_and_tile(n, 27 * EMBED_CH, 2)
    x_raw = jnp.pad(feat, ((0, n_pad - n), (0, 0)))        # f32, padded rows are zero

    # stem: conv->BN, (spike)->conv->BN, (spike)->conv->BN; spike + bf16 cast fused in epilogue
    s_idx = build_subm_rulebook(coords, n_pad)
    sc, sh = bn_affine(EMBED_CH)
    _, x_spk = sparse_conv(x_raw, s_idx, params['stem0'], sc, sh, tile)
    _, x_spk = sparse_conv(x_spk, s_idx, params['stem1'], sc, sh, tile)
    _, x_spk = sparse_conv(x_spk, s_idx, params['stem2'], sc, sh, tile)

    cur = coords
    x_final = None
    for i, c in enumerate(ENC_CHANNELS):
        last = (i == len(ENC_CHANNELS) - 1)

        # DownBlock.down: Multispike -> SparseConv3d(k=2, s=2) -> BN
        cur, d_core = build_down_rulebook(cur)
        n_new = cur.shape[0]
        n_pad, tile = _pad_and_tile(n_new, 27 * c, 2)
        d_idx = np.full((len(_DOWN_OFFSETS), n_pad), -1, np.int32)
        d_idx[:, :n_new] = d_core
        sc, sh = bn_affine(c)
        x_f32, x_spk = sparse_conv(x_spk, d_idx, params[f'down{i}'], sc, sh, tile,
                                   emit_f32=True)          # raw f32 needed as residual below

        # BasicBlock (enc_depth == 1): residuals fused into the kernel epilogue
        s_idx = build_subm_rulebook(cur, n_pad)
        f1_f32, f1_spk = sparse_conv(x_spk, s_idx, params[f'blk{i}'], sc, sh, tile,
                                     residual=x_f32, emit_f32=True)        # block(x) + x
        _, z_spk = sparse_conv(f1_spk, s_idx, params[f'vox{i}a'], sc, sh, tile)
        out_f32, out_spk = sparse_conv(z_spk, s_idx, params[f'vox{i}b'], sc, sh, tile,
                                       residual=f1_f32,
                                       emit_f32=last, emit_spike=not last)  # voxel_block(f)+res
        if last:
            x_final = out_f32       # final head consumes raw (un-spiked) features
        else:
            x_spk = out_spk

    # final SubMConv3d(kernel_size=1, bias=True) + scatter(mean): tiny shapes -> plain jnp
    n_cur = cur.shape[0]
    logits = x_final[:n_cur] @ params['final'][0] + params['final_bias']   # (n_cur, NUM_CLASSES)
    batch = cur[:, 0].astype(np.int64)
    n_batches = int(batch.max()) + 1
    sums = jnp.zeros((n_batches, NUM_CLASSES), jnp.float32).at[jnp.asarray(batch)].add(logits)
    counts = jnp.asarray(np.bincount(batch, minlength=n_batches).astype(np.float32))[:, None]
    return sums / counts                                                   # (batch, num_classes)


# ---------------- demo ----------------
if __name__ == "__main__":
    key = jax.random.PRNGKey(0)
    k_pts, k_feat, k_par = jax.random.split(key, 3)

    # two "point clouds": unique integer voxel coordinates on a 24^3 grid (voxelization is exact)
    n_per_batch = (60, 52)
    GRID = 24
    pk = jax.random.split(k_pts, len(n_per_batch))
    xyz_list = []
    for b, n_b in enumerate(n_per_batch):
        cells = np.asarray(jax.random.permutation(pk[b], GRID ** 3)[:n_b])
        z, rem = cells // (GRID * GRID), cells % (GRID * GRID)
        y, xx = rem // GRID, rem % GRID
        xyz_list.append(np.stack([z, y, xx], axis=1).astype(np.float32) * VOXEL_SIZE)
    feat = jax.random.normal(k_feat, (sum(n_per_batch), IN_CHANNELS), jnp.float32)

    coords = voxelize(xyz_list, VOXEL_SIZE)        # torch.cat([batch, grid_coord], dim=1)
    params = init_params(k_par)

    out = e3dsnn_forward(coords, feat, params)
    out = jax.block_until_ready(out)
    assert out.shape == (len(n_per_batch), NUM_CLASSES)
    assert bool(jnp.all(jnp.isfinite(out)))
    print("KERNEL_OK")
</pallas_src>

<mosaic_0001>
module attributes {stable_mosaic.version = 11 : i64} {
  func.func @kernel(%arg0: i32, %arg1: memref<64x108xf32, #tpu.memory_space<vmem>>, %arg2: memref<108x16xf32, #tpu.memory_space<vmem>>, %arg3: memref<1x16xf32, #tpu.memory_space<vmem>>, %arg4: memref<1x16xf32, #tpu.memory_space<vmem>>, %arg5: memref<64x16xbf16, #tpu.memory_space<vmem>>) attributes {dimension_semantics = [#tpu.dimension_semantics<parallel>], iteration_bounds = array<i64: 2>, scalar_prefetch = 0 : i64, scratch_operands = 0 : i64, tpu.core_type = #tpu.core_type<tc>, window_params = [{transform_indices = @transform_0, window_bounds = array<i64: 64, 108>}, {pipeline_mode = #tpu.pipeline_mode<synchronous>, transform_indices = @transform_1, window_bounds = array<i64: 108, 16>}, {pipeline_mode = #tpu.pipeline_mode<synchronous>, transform_indices = @transform_2, window_bounds = array<i64: 1, 16>}, {pipeline_mode = #tpu.pipeline_mode<synchronous>, transform_indices = @transform_3, window_bounds = array<i64: 1, 16>}, {transform_indices = @transform_4, window_bounds = array<i64: 64, 16>}]} {
    %c0 = arith.constant 0 : index
    %c0_0 = arith.constant 0 : index
    %0 = vector.load %arg1[%c0, %c0_0] : memref<64x108xf32, #tpu.memory_space<vmem>>, vector<64x108xf32>
    %c0_1 = arith.constant 0 : index
    %c0_2 = arith.constant 0 : index
    %1 = vector.load %arg2[%c0_1, %c0_2] : memref<108x16xf32, #tpu.memory_space<vmem>>, vector<108x16xf32>
    %cst = arith.constant dense<0.000000e+00> : vector<64x16xf32>
    %2 = tpu.matmul %0, %1, %cst {dimension_numbers = #tpu.dot_dimension_numbers<[1], [0], [0], [1], [0, 0, 1, 1], [], []>} : vector<64x108xf32>, vector<108x16xf32>, vector<64x16xf32> -> vector<64x16xf32>
    %c0_3 = arith.constant 0 : index
    %c0_4 = arith.constant 0 : index
    %3 = vector.load %arg3[%c0_3, %c0_4] : memref<1x16xf32, #tpu.memory_space<vmem>>, vector<1x16xf32>
    %4 = vector.broadcast %3 : vector<1x16xf32> to vector<64x16xf32>
    %5 = arith.mulf %2, %4 : vector<64x16xf32>
    %c0_5 = arith.constant 0 : index
    %c0_6 = arith.constant 0 : index
    %6 = vector.load %arg4[%c0_5, %c0_6] : memref<1x16xf32, #tpu.memory_space<vmem>>, vector<1x16xf32>
    %7 = vector.broadcast %6 : vector<1x16xf32> to vector<64x16xf32>
    %8 = arith.addf %5, %7 : vector<64x16xf32>
    %cst_7 = arith.constant 0.000000e+00 : f32
    %cst_8 = arith.constant 4.000000e+00 : f32
    %9 = vector.broadcast %cst_7 : f32 to vector<64x16xf32>
    %10 = arith.maximumf %9, %8 : vector<64x16xf32>
    %11 = vector.broadcast %cst_8 : f32 to vector<64x16xf32>
    %12 = arith.minimumf %11, %10 : vector<64x16xf32>
    %cst_9 = arith.constant 5.000000e-01 : f32
    %13 = vector.broadcast %cst_9 : f32 to vector<64x16xf32>
    %14 = arith.addf %12, %13 : vector<64x16xf32>
    %15 = math.floor %14 : vector<64x16xf32>
    %16 = arith.truncf %15 : vector<64x16xf32> to vector<64x16xbf16>
    %c0_10 = arith.constant 0 : index
    %c0_11 = arith.constant 0 : index
    %17 = vector.load %arg5[%c0_10, %c0_11] : memref<64x16xbf16, #tpu.memory_space<vmem>>, vector<64x16xbf16>
    tpu.vector_store %arg5[%c0_10, %c0_11], %16 {strides = array<i32>} : memref<64x16xbf16, #tpu.memory_space<vmem>>, vector<64x16xbf16>,
    return
  }
  func.func @transform_0(%arg0: i32) -> (i32, i32) {
    %c0_i32 = arith.constant 0 : i32
    %c0_i32_0 = arith.constant 0 : i32
    return %arg0, %c0_i32 : i32, i32
  }
  func.func @transform_1(%arg0: i32) -> (i32, i32) {
    %c0_i32 = arith.constant 0 : i32
    %c0_i32_0 = arith.constant 0 : i32
    %c0_i32_1 = arith.constant 0 : i32
    return %c0_i32, %c0_i32_0 : i32, i32
  }
  func.func @transform_2(%arg0: i32) -> (i32, i32) {
    %c0_i32 = arith.constant 0 : i32
    %c0_i32_0 = arith.constant 0 : i32
    %c0_i32_1 = arith.constant 0 : i32
    return %c0_i32, %c0_i32_0 : i32, i32
  }
  func.func @transform_3(%arg0: i32) -> (i32, i32) {
    %c0_i32 = arith.constant 0 : i32
    %c0_i32_0 = arith.constant 0 : i32
    %c0_i32_1 = arith.constant 0 : i32
    return %c0_i32, %c0_i32_0 : i32, i32
  }
  func.func @transform_4(%arg0: i32) -> (i32, i32) {
    %c0_i32 = arith.constant 0 : i32
    %c0_i32_0 = arith.constant 0 : i32
    return %arg0, %c0_i32 : i32, i32
  }
}

</mosaic_0001>

<bundles_post_ra>
// kernel: _conv_device.1
= control target key start
LH: loop header
LB: loop body
LE: loop exit
PB: predicated region body
PF: predicated region fallthrough
CT: control target
= control target key end

     0   :  { %s703_s15 = smov 0   ;;  %s798_s0 = inlined_call_operand.vmem [shape: f32[128,108], index: 0, kind: input, shape index: {}]   ;;  %s799_s1 = inlined_call_operand.vmem [shape: f32[108,16], index: 1, kind: input, shape index: {}]   ;;  %s800_s2 = inlined_call_operand.vmem [shape: f32[1,16], index: 2, kind: input, shape index: {}]   ;;  %s801_s3 = inlined_call_operand.vmem [shape: f32[1,16], index: 3, kind: input, shape index: {}]   ;;  %s802_s4 = inlined_call_operand.vmem [shape: bf16[128,16], index: 4, kind: output, shape index: {}]  }
   0x1 LB: > { %s516_s16 = sadd.s32 4294967295, %s675_s15   ;;  %p520_p0 = scmp.ge.s32.totalorder %s675_s15, 1  ;;  %s675_s15 = sphi %s703_s15, %s14_s15  }
   0x2   : > { %p163_p1 = scmp.lt.s32.totalorder %s675_s15, 3 }
   0x4   : > { %p164_p2 = pnand %p520_p0, %p163_p1 }
   0x5   : > { %v209_v0 = vld [vmem:[%s799_s1] sm:$0xff] (!%p164_p2)  ;;  %v210_v1 = vld [vmem:[%s799_s1 + $0x8] sm:$0xff] (!%p164_p2)  ;;  %v211_v2 = vld [vmem:[%s799_s1 + $0x10] sm:$0xff] (!%p164_p2)  ;;  %s521_s23 = sshll.u32 (!%p164_p2), %s516_s16, 3  ;;  %vm223_vm0 = vcmask (!%p164_p2), 883712   ;;  %vm248_vm1 = vcmask (!%p164_p2), 1043456  }
   0x6   : > { %167 = sbr.rel (%p164_p2) target bundleno = 269 (0x10d), region = 36  ;;  %v616_v3 = vpack.c.bf16 (!%p164_p2), %v210_v1, %v209_v0  ;;  %v212_v4 = vld [vmem:[%s799_s1 + $0x18] sm:$0xff] (!%p164_p2)  ;;  %p190_p3 = scmp.lt.s32.totalorder (!%p164_p2), %s521_s23, 15  ;;  %v213_v6 = vld [vmem:[%s799_s1 + $0x20] sm:$0xff] (!%p164_p2)  ;;  %v214_v7 = vld [vmem:[%s799_s1 + $0x28] sm:$0xff] (!%p164_p2)  ;;  %vm677_vm2 = vmmov (!%p164_p2), 1  }
   0x7   : > { %v620_v5 = vpack.c.bf16 (!%p164_p2), %v212_v4, %v211_v2  ;;  %v624_v8 = vpack.c.bf16 (!%p164_p2), %v214_v7, %v213_v6  ;;  %v215_v9 = vld [vmem:[%s799_s1 + $0x30] sm:$0xff] (!%p164_p2)  ;;  %v216_v10 = vld [vmem:[%s799_s1 + $0x38] sm:$0xff] (!%p164_p2)  ;;  %v217_v14 = vld [vmem:[%s799_s1 + $0x40] sm:$0xff] (!%p164_p2)  ;;  %vm451_vm4 = vcmask (!%p164_p2), 125952  }
   0x8   : > { %617 = vmatprep.subr.bf16.mxu0 (!%p164_p2), %v616_v3  ;;  %646 = vmatprep.subr.bf16.mxu1 (!%p164_p2), %v616_v3  ;;  %v628_v13 = vpack.c.bf16 (!%p164_p2), %v216_v10, %v215_v9  ;;  %v218_v15 = vld [vmem:[%s799_s1 + $0x48] sm:$0xff] (!%p164_p2)  ;;  %v219_v17 = vld [vmem:[%s799_s1 + $0x50] sm:$0xff] (!%p164_p2)  ;;  %v220_v18 = vld [vmem:[%s799_s1 + $0x58] sm:$0xff] (!%p164_p2) }
   0x9   : > { %619 = vmatpush3.bf16.msra.mxu0 (!%p164_p2), %v616_v3  ;;  %653 = vmatpush3.bf16.msra.mxu1 (!%p164_p2), %v616_v3  ;;  %v632_v16 = vpack.c.bf16 (!%p164_p2), %v218_v15, %v217_v14  ;;  %v636_v19 = vpack.c.bf16 (!%p164_p2), %v220_v18, %v219_v17  ;;  %v221_v20 = vld [vmem:[%s799_s1 + $0x60] sm:$0xff] (!%p164_p2)  ;;  %v222_v21 = vld [vmem:[%s799_s1 + $0x68] sm:$0xf] (!%p164_p2)  ;;  %vm641_vm3 = vmpackc.low (!%p164_p2), %vm248_vm1, %vm677_vm2 }
   0xa   : > { %621 = vmatprep.subr.bf16.mxu0 (!%p164_p2), %v620_v5  ;;  %647 = vmatprep.subr.bf16.mxu1 (!%p164_p2), %v620_v5  ;;  %v640_v22 = vpack.c.bf16 (!%p164_p2), %v222_v21, %v221_v20  ;;  %v534_v29 = vld [vmem:[%s800_s2] ss:$0 sm:$0xff] (!%p164_p2) }
   0xb   : > { %v535_v31 = vld [vmem:[%s801_s3] ss:$0 sm:$0xff] (!%p164_p2) }
   0xd   : > { %s804_s23 = smov (!%p190_p3, %s521_s23), 15  ;;  %623 = vmatpush3.bf16.msra.mxu0 %v620_v5  ;;  %654 = vmatpush3.bf16.msra.mxu1 %v620_v5 }
   0xe   : > { %s522_s30 = sshll.u32 %s804_s23, 3  ;;  %625 = vmatprep.subr.bf16.mxu0 %v624_v8  ;;  %648 = vmatprep.subr.bf16.mxu1 %v624_v8 }
   0xf   : > { %s741_s11 = scalar_lea.vmem %s798_s0, %s522_s30  ;;  %s524_s30 = sshll.u32 %s804_s23, 2 }
  0x10   : > { %v201_v11 = vld [vmem:[%s741_s11] sm:$0xff]  ;;  %v202_v23 = vld [vmem:[%s741_s11 + $0x8] sm:$0xff]  ;;  %v203_v25 = vld [vmem:[%s741_s11 + $0x10] sm:$0xff]  ;;  %s199_s7 = scalar_lea.vmem %s802_s4, %s524_s30 }
  0x11   : > { %v205_v12 = vld [vmem:[%s741_s11 + $0x20] sm:$0xff]  ;;  %604 = vmatprep.mubr.msk.f32.mxu0 %vm223_vm0, %v201_v11  ;;  %627 = vmatpush3.bf16.msra.mxu0 %v624_v8  ;;  %v206_v24 = vld [vmem:[%s741_s11 + $0x28] sm:$0xff]  ;;  %v207_v26 = vld [vmem:[%s741_s11 + $0x30] sm:$0xff] }
  0x12   : > { %610 = vmatprep.mubr.msk.f32.mxu1 %vm223_vm0, %v205_v12  ;;  %655 = vmatpush3.bf16.msra.mxu1 %v624_v8  ;;  %v204_v27 = vld [vmem:[%s741_s11 + $0x18] sm:$0xff] }
  0x13   : > { %629 = vmatprep.subr.bf16.mxu0 %v628_v13  ;;  %649 = vmatprep.subr.bf16.mxu1 %v628_v13  ;;  %v208_v28 = vld [vmem:[%s741_s11 + $0x38] sm:$0xff] }
  0x15   : > { %631 = vmatpush3.bf16.msra.mxu0 %v628_v13 }
  0x16   : > { %656 = vmatpush3.bf16.msra.mxu1 %v628_v13  ;;  %633 = vmatprep.subr.bf16.mxu0 %v632_v16 }
  0x17   : > { %650 = vmatprep.subr.bf16.mxu1 %v632_v16 }
  0x19   : > { %635 = vmatpush3.bf16.msra.mxu0 %v632_v16 }
  0x1a   : > { %657 = vmatpush3.bf16.msra.mxu1 %v632_v16  ;;  %637 = vmatprep.subr.bf16.mxu0 %v636_v19 }
  0x1b   : > { %651 = vmatprep.subr.bf16.mxu1 %v636_v19 }
  0x1d   : > { %639 = vmatpush3.bf16.msra.mxu0 %v636_v19 }
  0x1e   : > { %658 = vmatpush3.bf16.msra.mxu1 %v636_v19  ;;  %642 = vmatprep.subr.msk.bf16.mxu0 %vm641_vm3, %v640_v22 }
  0x1f   : > { %652 = vmatprep.subr.msk.bf16.mxu1 %vm641_vm3, %v640_v22 }
  0x21   : > { %645 = vmatpush3.bf16.msk.msra.mxu0 %vm641_vm3, %v640_v22 }
  0x22   : > { %659 = vmatpush3.bf16.msk.msra.mxu1 %vm641_vm3, %v640_v22 }
  0x24   : > { %605 = vmatmul.mubr.msk.f32.vlgmr.msra.gmra.mrb[0].mxu0 %vm223_vm0, %v202_v23 }
  0x25   : > { %611 = vmatmul.mubr.msk.f32.vlgmr.msra.gmra.mrb[0].mxu1 %vm223_vm0, %v206_v24  ;;  %607 = vmatprep.mubr.msk.f32.mxu0 %vm223_vm0, %v203_v25 }
  0x26   : > { %613 = vmatprep.mubr.msk.f32.mxu1 %vm223_vm0, %v207_v26 }
  0x28   : > { %608 = vmatmul.mubr.msk.f32.gmra.mrb[2].mxu0 %vm223_vm0, %v204_v27 }
  0x29   : > { %614 = vmatmul.mubr.msk.f32.gmra.mrb[2].mxu1 %vm223_vm0, %v208_v28 }
  0xf7   : > { %v606_v30 = vpop.f32.mrb[0].mxu0 }
  0xf8   : > { %v612_v32 = vpop.f32.mrb[0].mxu1  ;;  %v365_v33 = vmul.f32 %v606_v30, %v534_v29  ;;  %v318_v35 = vpop.f32.mrb[1].mxu0 }
  0xf9   : > { %v369_v34 = vmul.f32 %v612_v32, %v534_v29  ;;  %v338_v36 = vpop.f32.mrb[1].mxu1  ;;  %v364_v37 = vmul.f32 %v534_v29, %v318_v35 }
  0xfa   : > { %v368_v38 = vmul.f32 %v534_v29, %v338_v36  ;;  %v380_v39 = vadd.f32 %v535_v31, %v365_v33 }
  0xfb   : > { %v384_v40 = vadd.f32 %v535_v31, %v369_v34  ;;  %v379_v41 = vadd.f32 %v535_v31, %v364_v37  ;;  %v609_v43 = vpop.f32.mrb[2].mxu0 }
  0xfc   : > { %v383_v42 = vadd.f32 %v535_v31, %v368_v38  ;;  %v615_v44 = vpop.f32.mrb[2].mxu1  ;;  %v388_v45 = vmax.f32 %v380_v39, 0.0  ;;  %v367_v47 = vmul.f32 %v609_v43, %v534_v29  ;;  %v328_v49 = vpop.f32.mrb[3].mxu0 }
  0xfd   : > { %v392_v46 = vmax.f32 %v384_v40, 0.0  ;;  %v371_v48 = vmul.f32 %v615_v44, %v534_v29  ;;  %v348_v50 = vpop.f32.mrb[3].mxu1  ;;  %v387_v51 = vmax.f32 %v379_v41, 0.0  ;;  %v366_v53 = vmul.f32 %v534_v29, %v328_v49 }
  0xfe   : > { %v391_v52 = vmax.f32 %v383_v42, 0.0  ;;  %v370_v54 = vmul.f32 %v534_v29, %v348_v50  ;;  %v396_v55 = vmin.f32 %v388_v45, 4.0  ;;  %v382_v57 = vadd.f32 %v535_v31, %v367_v47 }
  0xff   : > { %v400_v56 = vmin.f32 %v392_v46, 4.0  ;;  %v386_v58 = vadd.f32 %v535_v31, %v371_v48  ;;  %v395_v59 = vmin.f32 %v387_v51, 4.0  ;;  %v381_v61 = vadd.f32 %v535_v31, %v366_v53 }
 0x100   : > { %v399_v60 = vmin.f32 %v391_v52, 4.0  ;;  %v385_v62 = vadd.f32 %v535_v31, %v370_v54  ;;  %v404_v63 = vadd.f32 0.5, %v396_v55  ;;  %v390_v1 = vmax.f32 %v382_v57, 0.0 }
 0x101   : > { %v408_v0 = vadd.f32 0.5, %v400_v56  ;;  %v394_v2 = vmax.f32 %v386_v58, 0.0  ;;  %v403_v3 = vadd.f32 0.5, %v395_v59  ;;  %v389_v5 = vmax.f32 %v381_v61, 0.0 }
 0x102   : > { %v407_v4 = vadd.f32 0.5, %v399_v60  ;;  %v393_v6 = vmax.f32 %v385_v62, 0.0  ;;  %v412_v7 = vfloor.f32 %v404_v63  ;;  %v398_v9 = vmin.f32 %v390_v1, 4.0 }
 0x103   : > { %v416_v8 = vfloor.f32 %v408_v0  ;;  %v402_v10 = vmin.f32 %v394_v2, 4.0  ;;  %v411_v11 = vfloor.f32 %v403_v3  ;;  %v397_v13 = vmin.f32 %v389_v5, 4.0 }
 0x104   : > { %v415_v12 = vfloor.f32 %v407_v4  ;;  %v401_v14 = vmin.f32 %v393_v6, 4.0  ;;  %v547_v15 = vpack.c.bf16 %v412_v7, %v412_v7  ;;  %v406_v17 = vadd.f32 0.5, %v398_v9 }
 0x105   : > { %v551_v16 = vpack.c.bf16 %v416_v8, %v416_v8  ;;  %v410_v18 = vadd.f32 0.5, %v402_v10  ;;  %v546_v19 = vpack.c.bf16 %v411_v11, %v411_v11  ;;  %v405_v21 = vadd.f32 0.5, %v397_v13 }
 0x106   : > { %v550_v20 = vpack.c.bf16 %v415_v12, %v415_v12  ;;  %v409_v22 = vadd.f32 0.5, %v401_v14  ;;  %453 = vst.msk [vmem:[%s199_s7 + $0x4] sm:$0xf] %vm451_vm4, %v547_v15  ;;  %v414_v23 = vfloor.f32 %v406_v17 }
 0x107   : > { %457 = vst.msk [vmem:[%s199_s7 + $0x14] sm:$0xf] %vm451_vm4, %v551_v16  ;;  %v418_v24 = vfloor.f32 %v410_v18  ;;  %452 = vst.msk [vmem:[%s199_s7] sm:$0xf] %vm451_vm4, %v546_v19  ;;  %v413_v25 = vfloor.f32 %v405_v21 }
 0x108   : > { %456 = vst.msk [vmem:[%s199_s7 + $0x10] sm:$0xf] %vm451_vm4, %v550_v20  ;;  %v417_v26 = vfloor.f32 %v409_v22  ;;  %v549_v27 = vpack.c.bf16 %v414_v23, %v414_v23 }
 0x109   : > { %v553_v28 = vpack.c.bf16 %v418_v24, %v418_v24  ;;  %v548_v29 = vpack.c.bf16 %v413_v25, %v413_v25 }
 0x10a   : > { %v552_v30 = vpack.c.bf16 %v417_v26, %v417_v26  ;;  %455 = vst.msk [vmem:[%s199_s7 + $0xc] sm:$0xf] %vm451_vm4, %v549_v27 }
 0x10b   : > { %459 = vst.msk [vmem:[%s199_s7 + $0x1c] sm:$0xf] %vm451_vm4, %v553_v28  ;;  %454 = vst.msk [vmem:[%s199_s7 + $0x8] sm:$0xf] %vm451_vm4, %v548_v29 }
 0x10c   : > { %458 = vst.msk [vmem:[%s199_s7 + $0x18] sm:$0xf] %vm451_vm4, %v552_v30 }
 0x10d PF: > { %s14_s15 = sadd.s32 1, %s675_s15  }
 0x10e   : > { %p11_p4 = scmp.ge.s32.totalorder %s14_s15, 4  }
 0x110   :  { %13 = sbr.rel (!%p11_p4) target bundleno = 1 (0x1), region = 66 }

</bundles_post_ra>
